<compile_context>
chip_gen: v7x
topology: tpu7x:2x2x1
jax: 0.10.0
libtpu: 0.0.40
codegen_flags: <defaults>
</compile_context>

<pallas_src>
import functools

import jax
import jax.numpy as jnp
from jax.experimental import pallas as pl
from jax.experimental.pallas import tpu as pltpu


def _round_up(x: int, m: int) -> int:
    return (x + m - 1) // m * m


def _discriminator_kernel(x_ref, w1_ref, b1_ref, w2_ref, b2_ref, o_ref, *,
                          normalize_output: bool):
    # x:  (TB, Din) f32   w1: (Din, Dout) bf16   w2: (Dout, Dout) bf16
    # b1, b2: (1, Dout) f32                      o:  (TB, Dout) out_dtype
    x = x_ref[...].astype(jnp.bfloat16)          # cast folded onto loaded tile
    # fc1: x @ W1 + b1   (MXU bf16 operands, f32 accumulate)
    h = jnp.dot(x, w1_ref[...], preferred_element_type=jnp.float32)
    h = jnp.maximum(h + b1_ref[...], 0.0)        # bias + ReLU in f32
    # fc2: relu(h) @ W2 + b2
    y = jnp.dot(h.astype(jnp.bfloat16), w2_ref[...],
                preferred_element_type=jnp.float32)
    y = y + b2_ref[...]
    if normalize_output:
        # No feature padding -> the sum over axis 1 is exactly ||y||^2.
        sumsq = jnp.sum(y * y, axis=1, keepdims=True)    # (TB, 1)
        # rsqrt lowers to the EUP (free slot).  No epsilon: a zero-norm row
        # yields NaN, matching PyTorch's `fc2_out / 0`.
        y = y * jax.lax.rsqrt(sumsq)
    o_ref[...] = y.astype(o_ref.dtype)


def prepare_discriminator_params(w1, b1, w2, b2):
    """One-time param prep: transpose torch-layout (out, in) weights to
    (in, out), cast weights to bf16 (MXU operands), keep biases as f32 rows.
    No padding -- feature dims are used at their true size."""
    w1 = jnp.asarray(w1, jnp.float32)
    w2 = jnp.asarray(w2, jnp.float32)
    out_dim, in_dim = w1.shape
    assert w2.shape == (out_dim, out_dim), "fc2 must be (out_dim, out_dim)"
    w1_t = w1.T.astype(jnp.bfloat16)                          # (in,  out)
    w2_t = w2.T.astype(jnp.bfloat16)                          # (out, out)
    b1_r = jnp.asarray(b1, jnp.float32).reshape(1, out_dim)
    b2_r = jnp.asarray(b2, jnp.float32).reshape(1, out_dim)
    return w1_t, b1_r, w2_t, b2_r


def _choose_batch_tile(B: int) -> int:
    # Small batches: one full-extent block (no divisibility constraints and
    # the ~0.35us/step grid overhead dominates anyway).
    if B <= 128:
        return B
    # Larger batches: at least two grid steps so both v7x TensorCores get
    # work on the "parallel" batch axis; cap the tile so per-step VMEM stays
    # tiny while amortizing per-step overhead and the resident-weight reuse.
    return min(1024, _round_up(-(-B // 2), 8))


def discriminator_forward(x, w1_t, b1_r, w2_t, b2_r, *,
                          normalize_output=True, out_dtype=jnp.bfloat16):
    """x: (B, in_dim). w1_t/b1_r/w2_t/b2_r from prepare_discriminator_params."""
    B, in_dim = x.shape
    din, out_dim = w1_t.shape
    assert din == in_dim, "x feature dim must match fc1 in_dim"

    tb = _choose_batch_tile(B)
    kernel = functools.partial(_discriminator_kernel,
                               normalize_output=normalize_output)

    return pl.pallas_call(
        kernel,
        out_shape=jax.ShapeDtypeStruct((B, out_dim), out_dtype),
        grid=(pl.cdiv(B, tb),),                              # ragged last block
        in_specs=[
            pl.BlockSpec((tb, in_dim), lambda i: (i, 0)),    # x tile (pipelined)
            pl.BlockSpec((in_dim, out_dim), lambda i: (0, 0)),   # W1 resident
            pl.BlockSpec((1, out_dim), lambda i: (0, 0)),        # b1 resident
            pl.BlockSpec((out_dim, out_dim), lambda i: (0, 0)),  # W2 resident
            pl.BlockSpec((1, out_dim), lambda i: (0, 0)),        # b2 resident
        ],
        out_specs=pl.BlockSpec((tb, out_dim), lambda i: (i, 0)),
        compiler_params=pltpu.CompilerParams(
            dimension_semantics=("parallel",),   # megacore split on v7x
            vmem_limit_bytes=32 * 1024 * 1024,   # v5e scoped default is 16 MiB
        ),
    )(x, w1_t, b1_r, w2_t, b2_r)


def init_discriminator_params(in_dim, out_dim):
    """Deterministic params mirroring the module's __init__: nn.init.eye_ on
    both weights; biases use a fixed deterministic ramp (torch's default bias
    init is random)."""
    w1 = jnp.eye(out_dim, in_dim, dtype=jnp.float32)      # (out, in), torch layout
    w2 = jnp.eye(out_dim, out_dim, dtype=jnp.float32)     # (out, out)
    b1 = jnp.linspace(-0.05, 0.05, out_dim, dtype=jnp.float32)
    b2 = jnp.linspace(0.05, -0.05, out_dim, dtype=jnp.float32)
    return w1, b1, w2, b2


def _reference_forward(x, w1, b1, w2, b2, normalize_output=True):
    # Pure-JAX f32 reference of the PyTorch forward.
    h = x @ w1.T + b1
    y = jnp.maximum(h, 0.0) @ w2.T + b2
    if normalize_output:
        n = jnp.sqrt(jnp.sum(y * y, axis=1, keepdims=True))
        y = y / n
    return y


if __name__ == "__main__":
    in_dim, out_dim = 32, 32
    key = jax.random.PRNGKey(0)
    w1, b1, w2, b2 = init_discriminator_params(in_dim, out_dim)
    # Prepare (transpose/cast) ONCE; reuse across forward calls.
    w1_t, b1_r, w2_t, b2_r = prepare_discriminator_params(w1, b1, w2, b2)

    ok = True
    # B=8: single aligned block; B=37: single full-extent (non-multiple-of-8)
    # block; B=200: two grid steps with a ragged last block (megacore path).
    for B in (8, 37, 200):
        key, sub = jax.random.split(key)
        x = jax.random.normal(sub, (B, in_dim), dtype=jnp.float32)

        out = discriminator_forward(x, w1_t, b1_r, w2_t, b2_r,
                                    normalize_output=True)
        out = jax.block_until_ready(out)

        ref = _reference_forward(x, w1, b1, w2, b2, normalize_output=True)
        assert out.shape == (B, out_dim)
        # bf16 matmul operands + bf16 output store -> loose tolerance vs f32 ref.
        ok = ok and bool(jnp.allclose(out.astype(jnp.float32), ref,
                                      atol=3e-2, rtol=3e-2))

    assert ok, "mismatch vs reference"
    print("KERNEL_OK")
</pallas_src>

<mosaic_0001>
module attributes {stable_mosaic.version = 11 : i64} {
  func.func @_discriminator_kernel(%arg0: i32, %arg1: memref<8x32xf32, #tpu.memory_space<vmem>>, %arg2: memref<32x32xbf16, #tpu.memory_space<vmem>>, %arg3: memref<1x32xf32, #tpu.memory_space<vmem>>, %arg4: memref<32x32xbf16, #tpu.memory_space<vmem>>, %arg5: memref<1x32xf32, #tpu.memory_space<vmem>>, %arg6: memref<8x32xbf16, #tpu.memory_space<vmem>>) attributes {dimension_semantics = [#tpu.dimension_semantics<parallel>], iteration_bounds = array<i64: 1>, scalar_prefetch = 0 : i64, scratch_operands = 0 : i64, tpu.core_type = #tpu.core_type<tc>, window_params = [{transform_indices = @transform_0, window_bounds = array<i64: 8, 32>}, {pipeline_mode = #tpu.pipeline_mode<synchronous>, transform_indices = @transform_1, window_bounds = array<i64: 32, 32>}, {pipeline_mode = #tpu.pipeline_mode<synchronous>, transform_indices = @transform_2, window_bounds = array<i64: 1, 32>}, {pipeline_mode = #tpu.pipeline_mode<synchronous>, transform_indices = @transform_3, window_bounds = array<i64: 32, 32>}, {pipeline_mode = #tpu.pipeline_mode<synchronous>, transform_indices = @transform_4, window_bounds = array<i64: 1, 32>}, {transform_indices = @transform_5, window_bounds = array<i64: 8, 32>}]} {
    %c0 = arith.constant 0 : index
    %c0_0 = arith.constant 0 : index
    %0 = vector.load %arg1[%c0, %c0_0] : memref<8x32xf32, #tpu.memory_space<vmem>>, vector<8x32xf32>
    %1 = arith.truncf %0 : vector<8x32xf32> to vector<8x32xbf16>
    %c0_1 = arith.constant 0 : index
    %c0_2 = arith.constant 0 : index
    %2 = vector.load %arg2[%c0_1, %c0_2] : memref<32x32xbf16, #tpu.memory_space<vmem>>, vector<32x32xbf16>
    %cst = arith.constant dense<0.000000e+00> : vector<8x32xf32>
    %3 = tpu.matmul %1, %2, %cst {dimension_numbers = #tpu.dot_dimension_numbers<[1], [0], [0], [1], [0, 0, 1, 1], [], []>} : vector<8x32xbf16>, vector<32x32xbf16>, vector<8x32xf32> -> vector<8x32xf32>
    %c0_3 = arith.constant 0 : index
    %c0_4 = arith.constant 0 : index
    %4 = vector.load %arg3[%c0_3, %c0_4] : memref<1x32xf32, #tpu.memory_space<vmem>>, vector<1x32xf32>
    %5 = vector.broadcast %4 : vector<1x32xf32> to vector<8x32xf32>
    %6 = arith.addf %3, %5 : vector<8x32xf32>
    %cst_5 = arith.constant 0.000000e+00 : f32
    %7 = vector.broadcast %cst_5 : f32 to vector<8x32xf32>
    %8 = arith.maximumf %6, %7 : vector<8x32xf32>
    %9 = arith.truncf %8 : vector<8x32xf32> to vector<8x32xbf16>
    %c0_6 = arith.constant 0 : index
    %c0_7 = arith.constant 0 : index
    %10 = vector.load %arg4[%c0_6, %c0_7] : memref<32x32xbf16, #tpu.memory_space<vmem>>, vector<32x32xbf16>
    %cst_8 = arith.constant dense<0.000000e+00> : vector<8x32xf32>
    %11 = tpu.matmul %9, %10, %cst_8 {dimension_numbers = #tpu.dot_dimension_numbers<[1], [0], [0], [1], [0, 0, 1, 1], [], []>} : vector<8x32xbf16>, vector<32x32xbf16>, vector<8x32xf32> -> vector<8x32xf32>
    %c0_9 = arith.constant 0 : index
    %c0_10 = arith.constant 0 : index
    %12 = vector.load %arg5[%c0_9, %c0_10] : memref<1x32xf32, #tpu.memory_space<vmem>>, vector<1x32xf32>
    %13 = vector.broadcast %12 : vector<1x32xf32> to vector<8x32xf32>
    %14 = arith.addf %11, %13 : vector<8x32xf32>
    %15 = arith.mulf %14, %14 : vector<8x32xf32>
    %cst_11 = arith.constant dense<0.000000e+00> : vector<8xf32>
    %16 = vector.multi_reduction <add>, %15, %cst_11 [1] : vector<8x32xf32> to vector<8xf32>
    %17 = vector.shape_cast %16 : vector<8xf32> to vector<8x1xf32>
    %18 = math.rsqrt %17 : vector<8x1xf32>
    %19 = vector.broadcast %18 : vector<8x1xf32> to vector<8x32xf32>
    %20 = arith.mulf %14, %19 : vector<8x32xf32>
    %21 = arith.truncf %20 : vector<8x32xf32> to vector<8x32xbf16>
    %c0_12 = arith.constant 0 : index
    %c0_13 = arith.constant 0 : index
    %22 = vector.load %arg6[%c0_12, %c0_13] : memref<8x32xbf16, #tpu.memory_space<vmem>>, vector<8x32xbf16>
    tpu.vector_store %arg6[%c0_12, %c0_13], %21 {strides = array<i32>} : memref<8x32xbf16, #tpu.memory_space<vmem>>, vector<8x32xbf16>,
    return
  }
  func.func @transform_0(%arg0: i32) -> (i32, i32) {
    %c0_i32 = arith.constant 0 : i32
    %c0_i32_0 = arith.constant 0 : i32
    return %arg0, %c0_i32 : i32, i32
  }
  func.func @transform_1(%arg0: i32) -> (i32, i32) {
    %c0_i32 = arith.constant 0 : i32
    %c0_i32_0 = arith.constant 0 : i32
    %c0_i32_1 = arith.constant 0 : i32
    return %c0_i32, %c0_i32_0 : i32, i32
  }
  func.func @transform_2(%arg0: i32) -> (i32, i32) {
    %c0_i32 = arith.constant 0 : i32
    %c0_i32_0 = arith.constant 0 : i32
    %c0_i32_1 = arith.constant 0 : i32
    return %c0_i32, %c0_i32_0 : i32, i32
  }
  func.func @transform_3(%arg0: i32) -> (i32, i32) {
    %c0_i32 = arith.constant 0 : i32
    %c0_i32_0 = arith.constant 0 : i32
    %c0_i32_1 = arith.constant 0 : i32
    return %c0_i32, %c0_i32_0 : i32, i32
  }
  func.func @transform_4(%arg0: i32) -> (i32, i32) {
    %c0_i32 = arith.constant 0 : i32
    %c0_i32_0 = arith.constant 0 : i32
    %c0_i32_1 = arith.constant 0 : i32
    return %c0_i32, %c0_i32_0 : i32, i32
  }
  func.func @transform_5(%arg0: i32) -> (i32, i32) {
    %c0_i32 = arith.constant 0 : i32
    %c0_i32_0 = arith.constant 0 : i32
    return %arg0, %c0_i32 : i32, i32
  }
}

</mosaic_0001>

<bundles_post_ra>
// kernel: tpu_custom_call.1
= control target key start
LH: loop header
LB: loop body
LE: loop exit
PB: predicated region body
PF: predicated region fallthrough
CT: control target
= control target key end

     0   :  { %10 = vsyncpa [#allocation3], 0  ;;  %s462_s0 = inlined_call_operand.hbm [shape: f32[8,32], index: 0, kind: input, shape index: {}]   ;;  %s463_s1 = inlined_call_operand.hbm [shape: bf16[32,32], index: 1, kind: input, shape index: {}]   ;;  %s464_s2 = inlined_call_operand.vmem [shape: f32[1,32], index: 2, kind: input, shape index: {}]   ;;  %s465_s3 = inlined_call_operand.hbm [shape: bf16[32,32], index: 3, kind: input, shape index: {}]   ;;  %s466_s4 = inlined_call_operand.vmem [shape: f32[1,32], index: 4, kind: input, shape index: {}]   ;;  %s467_s5 = inlined_call_operand.hbm [shape: bf16[8,32], index: 5, kind: output, shape index: {}]  }
   0x1   :  { %11 = vsyncpa [#allocation6], 0 }
   0x2   :  { %12 = vsyncpa [#allocation4], 0  ;;  %s361_s18 = smov [#allocation5]   ;;  %s267_s22 = scalar_lea.hbm %s463_s1, 256 }
   0x3   :  { %s28_s19 = sshll.u32 %s361_s18, 4  ;;  %p268_p0 = scmp.ne.s32.totalorder %s463_s1, %s267_s22  ;;  %s29_s19 = int_to_ptr.vmem [resolvable:$true] %s28_s19 }
   0x4   :  { %p271_p1 = scmp.lt.u32.totalorder %s267_s22, %s463_s1 }
   0x6   :  { %p273_p2 = pnand %p271_p1, %p268_p0 }
   0x8   :  { %276 = shalt.err (!%p273_p2)
}
   0x9   :  { %s277_s27 = scalar_lea.vmem %s29_s19, 256  ;;  %p282_p4 = scmp.lt.s32.totalorder %s29_s19, %s29_s19 }
   0xa   :  { %p278_p3 = scmp.ne.s32.totalorder %s29_s19, %s277_s27  ;;  %p283_p5 = scmp.lt.s32.totalorder %s277_s27, %s277_s27 }
   0xc   :  { %p284_p6 = por %p283_p5, %p282_p4 }
   0xe   :  { %p285_p7 = pnand %p284_p6, %p278_p3 }
  0x10   :  { %288 = shalt.err (!%p285_p7)
}
  0x11   :  { %s362_s28 = smov 64   ;;  %s363_s29 = smov 4  }
  0x12   :  { %34 = dma.hbm_to_vmem [thread:$0]  %s463_s1, 256, %s29_s19, [#allocation6], %s362_s28, %s362_s28, %s363_s29  }
  0x13   :  { %s364_s7 = smov [#allocation2]   ;;  %s365_s9 = smov [#allocation7]  }
  0x14   :  { %s19_s8 = sshll.u32 %s364_s7, 4  ;;  %s42_s10 = sshll.u32 %s365_s9, 4  ;;  %s20_s8 = int_to_ptr.vmem [resolvable:$true] %s19_s8  ;;  %s43_s10 = int_to_ptr.vmem [resolvable:$true] %s42_s10 }
  0x15   :  { %s289_s13 = scalar_lea.hbm %s462_s0, 128 }
  0x16   :  { %p290_p8 = scmp.ne.s32.totalorder %s462_s0, %s289_s13  ;;  %p293_p9 = scmp.lt.u32.totalorder %s289_s13, %s462_s0 }
  0x18   :  { %p295_p10 = pnand %p293_p9, %p290_p8 }
  0x1a   :  { %298 = shalt.err (!%p295_p10)
}
  0x1b   :  { %s299_s1 = scalar_lea.vmem %s20_s8, 128  ;;  %p304_p12 = scmp.lt.s32.totalorder %s20_s8, %s20_s8 }
  0x1c   :  { %p300_p11 = scmp.ne.s32.totalorder %s20_s8, %s299_s1  ;;  %p305_p13 = scmp.lt.s32.totalorder %s299_s1, %s299_s1 }
  0x1e   :  { %p306_p0 = por %p305_p13, %p304_p12 }
  0x20   :  { %p307_p1 = pnand %p306_p0, %p300_p11 }
  0x22   :  { %310 = shalt.err (!%p307_p1)
}
  0x23   :  { %22 = dma.hbm_to_vmem [thread:$0]  %s462_s0, 128, %s20_s8, [#allocation3]  }
  0x24   :  { %s311_s22 = scalar_lea.hbm %s465_s3, 256 }
  0x25   :  { %p312_p2 = scmp.ne.s32.totalorder %s465_s3, %s311_s22  ;;  %p315_p3 = scmp.lt.u32.totalorder %s311_s22, %s465_s3 }
  0x27   :  { %p317_p4 = pnand %p315_p3, %p312_p2 }
  0x29   :  { %320 = shalt.err (!%p317_p4)
}
  0x2a   :  { %s321_s27 = scalar_lea.vmem %s43_s10, 256  ;;  %p326_p6 = scmp.lt.s32.totalorder %s43_s10, %s43_s10 }
  0x2b   :  { %p322_p5 = scmp.ne.s32.totalorder %s43_s10, %s321_s27  ;;  %p327_p7 = scmp.lt.s32.totalorder %s321_s27, %s321_s27 }
  0x2d   :  { %p328_p8 = por %p327_p7, %p326_p6 }
  0x2f   :  { %p329_p9 = pnand %p328_p8, %p322_p5 }
  0x31   :  { %332 = shalt.err (!%p329_p9)
}
  0x32   :  { %48 = dma.hbm_to_vmem [thread:$0]  %s465_s3, 256, %s43_s10, [#allocation6], %s362_s28, %s362_s28, %s363_s29  }
  0x33   :  { %355 = dma.done.wait [#allocation3], 128  }
  0x34   :  { %356 = vsyncadd [#allocation3], 4294967168 }
  0x35   :  { %357 = dma.done.wait [#allocation6], 512  }
  0x36   :  { %358 = vsyncadd [#allocation6], 4294966784  ;;  %v366_v0 = vmov 0.0   ;;  %vm367_vm0 = vmmov 0   ;;  %v261_v1 = vld [vmem:[#allocation5] sm:$0xff]   ;;  %v262_v2 = vld [vmem:[#allocation5 + $0x8] sm:$0xff]  }
  0x37   :  { %237 = vmatprep.subr.bf16.mxu0 %v366_v0  ;;  %241 = vmatprep.mubr.msk.bf16.mxu0 %vm367_vm0, %v366_v0  ;;  %v61_v3 = vld [vmem:[#allocation2] sm:$0xff]  ;;  %vm86_vm1 = vcmask 261120   ;;  %v263_v5 = vld [vmem:[#allocation7] sm:$0xff]   ;;  %vm205_vm2 = vcmask 257024  }
  0x38   :  { %245 = vmatprep.subr.bf16.mxu1 %v366_v0  ;;  %249 = vmatprep.mubr.msk.bf16.mxu1 %vm367_vm0, %v366_v0  ;;  %v62_v4 = vpack.c.bf16 %v61_v3, %v61_v3  ;;  %v264_v6 = vld [vmem:[#allocation7 + $0x8] sm:$0xff]  }
  0x39   :  { %238 = vmatpush3.bf16.msra.mxu0 %v261_v1  ;;  %246 = vmatpush3.bf16.msra.mxu1 %v263_v5  ;;  %v223_v7 = vld [vmem:[%s464_s2] ss:$0 sm:$0xff]  ;;  %s368_s2 = smov [#allocation8]  }
  0x3a   :  { %239 = vmatprep.subr.bf16.mxu0 %v366_v0  ;;  %247 = vmatprep.subr.bf16.mxu1 %v366_v0  ;;  %v227_v15 = vld [vmem:[%s466_s4] ss:$0 sm:$0xff]  ;;  %s213_s7 = sshll.u32 %s368_s2, 4  ;;  %s214_s7 = int_to_ptr.vmem [resolvable:$true] %s213_s7 }
  0x3b   :  { %s333_s4 = scalar_lea.vmem %s214_s7, 64  ;;  %p338_p11 = scmp.lt.s32.totalorder %s214_s7, %s214_s7 }
  0x3c   :  { %p334_p10 = scmp.ne.s32.totalorder %s214_s7, %s333_s4  ;;  %p339_p12 = scmp.lt.s32.totalorder %s333_s4, %s333_s4 }
  0x3d   :  { %240 = vmatpush3.bf16.msra.mxu0 %v262_v2  ;;  %248 = vmatpush3.bf16.msra.mxu1 %v264_v6 }
  0x3e   :  { %p340_p13 = por %p339_p12, %p338_p11 }
  0x40   :  { %242 = vmatmul.mubr.msk.bf16.vlgmr.msra.gmra.mrb[0].mxu0 %vm86_vm1, %v62_v4  ;;  %p341_p0 = pnand %p340_p13, %p334_p10 }
 0x113   :  { %v124_v8 = vpop.f32.mrb[0].mxu0 }
 0x114   :  { %v125_v9 = vadd.f32 %v223_v7, %v124_v8  ;;  %v243_v10 = vpop.f32.mrb[1].mxu0 }
 0x115   :  { %v127_v11 = vpop.f32.mrb[2].mxu0 }
 0x116   :  { %v130_v12 = vmax.f32 %v125_v9, 0.0  ;;  %v244_v13 = vpop.f32.mrb[3].mxu0 }
 0x118   :  { %v131_v14 = vpack.c.bf16 %v130_v12, %v130_v12 }
 0x11a   :  { %250 = vmatmul.mubr.msk.bf16.vlgmr.msra.gmra.mrb[0].mxu1 %vm86_vm1, %v131_v14 }
 0x1ed   :  { %v192_v16 = vpop.f32.mrb[0].mxu1 }
 0x1ee   :  { %v193_v17 = vadd.f32 %v227_v15, %v192_v16  ;;  %v251_v18 = vpop.f32.mrb[1].mxu1 }
 0x1ef   :  { %v195_v19 = vpop.f32.mrb[2].mxu1 }
 0x1f0   :  { %v252_v20 = vpop.f32.mrb[3].mxu1  ;;  %v198_v21 = vmul.f32 %v193_v17, %v193_v17 }
 0x1f2   :  { %v199_v22 = vsel %vm86_vm1, %v198_v21, 0.0 }
 0x1f3   :  { %200 = vadd.xlane.f32.xlu0 %v199_v22 }
 0x280   :  { %v201_v23 = vpop.xlane.xlu0 %200 }
 0x281   :  { %265 = vrsqrt.f32 %v201_v23 }
 0x28b   :  { %v266_v24 = vpop.eup %265 }
 0x28c   :  { %v203_v25 = vmul.f32 %v266_v24, %v193_v17 }
 0x28e   :  { %v204_v26 = vpack.c.bf16 %v203_v25, %v203_v25 }
 0x290   :  { %206 = vst.msk [vmem:[#allocation8] sm:$0xf] %vm205_vm2, %v204_v26 }
 0x291   :  { %344 = shalt.err (!%p341_p0)
}
 0x292   :  { %s345_s10 = scalar_lea.hbm %s467_s5, 64 }
 0x293   :  { %p346_p1 = scmp.ne.s32.totalorder %s467_s5, %s345_s10  ;;  %p349_p2 = scmp.lt.u32.totalorder %s345_s10, %s467_s5 }
 0x295   :  { %p351_p3 = pnand %p349_p2, %p346_p1 }
 0x297   :  { %354 = shalt.err (!%p351_p3)
}
 0x298   :  { %216 = dma.vmem_to_hbm [thread:$0]  %s214_s7, 64, %s467_s5, [#allocation4]  }
 0x299   :  { %359 = dma.done.wait [#allocation4], 64  }
 0x29a   :  { %360 = vsyncadd [#allocation4], 4294967232 }
 0x29b   :  { %220 = vsyncpa [#allocation3], 1 }
 0x29c   :  { %221 = vsyncpa [#allocation6], 1 }
 0x29d   :  { %222 = vsyncpa [#allocation4], 1 }

</bundles_post_ra>
